<compile_context>
chip_gen: v7x
topology: tpu7x:2x2x1
jax: 0.10.0
libtpu: 0.0.40
codegen_flags: <defaults>
</compile_context>

<pallas_src>
import jax
import jax.numpy as jnp
from jax import lax
from jax.experimental import pallas as pl
from jax.experimental.pallas import tpu as pltpu

LN_EPS = 1e-5  # PyTorch nn.LayerNorm default


def _patch_merging_kernel(x_ref, gamma_ref, beta_ref, w_ref, o_ref, xn_ref):
    # x_ref:     (TB, 4C, W2)  TB merged slabs (one slab = one (b, h2) row)
    # gamma_ref: (1, W2)       LayerNorm weight (normalized_shape = 4*dim = W2)
    # beta_ref:  (1, W2)       LayerNorm bias
    # w_ref:     (2C, 4C)      1x1 conv weight (squeezed from (2C, 4C, 1, 1))
    # o_ref:     (TB, 2C, W2)
    # xn_ref:    VMEM scratch  (TB, 4C, W2), input dtype
    tb = x_ref.shape[0]

    # --- LayerNorm over the last axis (W2 == 4*dim), whole block at once ---
    x = x_ref[...].astype(jnp.float32)
    mean = jnp.mean(x, axis=-1, keepdims=True)
    ex2 = jnp.mean(x * x, axis=-1, keepdims=True)
    inv_std = lax.rsqrt(ex2 - mean * mean + LN_EPS)          # single-pass var
    xn = (x - mean) * inv_std
    xn = xn * gamma_ref[...].astype(jnp.float32) + beta_ref[...].astype(jnp.float32)
    xn_ref[...] = xn.astype(xn_ref.dtype)

    # --- 1x1 conv == matmul contracting the (4C) channel axis, per slab ---
    w = w_ref[...]

    def body(t, carry):
        y = jnp.dot(w, xn_ref[t], preferred_element_type=jnp.float32)  # (2C, W2)
        o_ref[t] = y.astype(o_ref.dtype)
        return carry

    lax.fori_loop(0, tb, body, 0)


def _choose_tb(num_slabs, slab_bytes, target_bytes=2 * 1024 * 1024):
    """Largest divisor of num_slabs whose block fits ~target_bytes."""
    divisors = [d for d in range(1, num_slabs + 1)
                if num_slabs % d == 0 and d * slab_bytes <= target_bytes]
    if not divisors:
        return 1
    tb = divisors[-1]
    # Prefer >= 2 grid steps (pipelining / 2 TCs on v7x) when it is cheap.
    if tb == num_slabs and len(divisors) >= 2 and divisors[-2] * 2 >= num_slabs:
        tb = divisors[-2]
    return tb


@jax.jit
def patch_merging_forward(x, gamma, beta, conv_w):
    """x: (B, C, H, W).  Returns (B, 2C, H//2, W//2) in x.dtype."""
    B, C, H, W = x.shape
    assert H % 2 == 0 and W % 2 == 0
    H2, W2 = H // 2, W // 2
    C4, C2 = 4 * C, 2 * C
    # nn.LayerNorm(4*dim) applied to NCHW requires last dim == 4*dim:
    assert W2 == C4, "LayerNorm(4*dim) on NCHW needs W//2 == 4*dim"

    S = B * H2  # number of (b, h2) slabs

    # --- single-copy glue: free reshape -> one 6-D transpose -> free reshape
    # xk[b*H2+h2, (2*dw+dh)*C + c, w2] = x[b, c, 2*h2+dh, 2*w2+dw]
    # which matches concat([x0, x1, x2, x3], axis=1) channel ordering.
    xk = (x.reshape(B, C, H2, 2, W2, 2)
            .transpose(0, 2, 5, 3, 1, 4)
            .reshape(S, C4, W2))

    gamma2d = gamma.reshape(1, W2)
    beta2d = beta.reshape(1, W2)
    w2d = conv_w.reshape(C2, C4).astype(x.dtype)   # keep matmul in input dtype

    itemsize = jnp.dtype(x.dtype).itemsize
    TB = _choose_tb(S, C4 * W2 * itemsize)
    grid = (S // TB,)

    out = pl.pallas_call(
        _patch_merging_kernel,
        out_shape=jax.ShapeDtypeStruct((S, C2, W2), x.dtype),
        grid_spec=pltpu.PrefetchScalarGridSpec(
            num_scalar_prefetch=0,
            grid=grid,
            in_specs=[
                pl.BlockSpec((TB, C4, W2), lambda i: (i, 0, 0)),
                pl.BlockSpec((1, W2), lambda i: (0, 0)),
                pl.BlockSpec((1, W2), lambda i: (0, 0)),
                pl.BlockSpec((C2, C4), lambda i: (0, 0)),
            ],
            out_specs=pl.BlockSpec((TB, C2, W2), lambda i: (i, 0, 0)),
            scratch_shapes=[pltpu.VMEM((TB, C4, W2), x.dtype)],
        ),
        compiler_params=pltpu.CompilerParams(
            dimension_semantics=("parallel",),
            vmem_limit_bytes=48 * 1024 * 1024,
        ),
    )(xk, gamma2d, beta2d, w2d)

    # back to NCHW: (B*H2, 2C, W2) -> (B, 2C, H2, W2)  (one transpose)
    y = out.reshape(B, H2, C2, W2).transpose(0, 2, 1, 3)
    return y


def _reference(x, gamma, beta, conv_w):
    """Pure-JAX reference mirroring the PyTorch forward exactly."""
    x0 = x[:, :, 0::2, 0::2]
    x1 = x[:, :, 1::2, 0::2]
    x2 = x[:, :, 0::2, 1::2]
    x3 = x[:, :, 1::2, 1::2]
    xm = jnp.concatenate([x0, x1, x2, x3], axis=1)            # (B, 4C, H2, W2)
    mean = xm.mean(-1, keepdims=True)
    var = ((xm - mean) ** 2).mean(-1, keepdims=True)
    xn = (xm - mean) / jnp.sqrt(var + LN_EPS) * gamma + beta
    w2d = conv_w.reshape(conv_w.shape[0], conv_w.shape[1])
    return jnp.einsum('oc,bchw->bohw', w2d, xn)


if __name__ == "__main__":
    # Small shapes consistent with the module:
    #   dim = 4 -> 4*dim = 16, so W//2 must be 16 -> W = 32.
    B, dim, H, W = 2, 4, 16, 32
    C4, C2 = 4 * dim, 2 * dim

    key = jax.random.PRNGKey(0)
    k1, k2, k3, k4 = jax.random.split(key, 4)

    x = jax.random.normal(k1, (B, dim, H, W), dtype=jnp.float32)
    # Deterministic synthetic parameters (module __init__ shapes):
    #   norm:      LayerNorm(4*dim) -> weight/bias of shape (4*dim,)
    #   reduction: Conv2d(4*dim, 2*dim, 1, 1, bias=False) -> (2*dim, 4*dim, 1, 1)
    gamma = 1.0 + 0.1 * jax.random.normal(k2, (C4,), dtype=jnp.float32)
    beta = 0.1 * jax.random.normal(k3, (C4,), dtype=jnp.float32)
    conv_w = 0.1 * jax.random.normal(k4, (C2, C4, 1, 1), dtype=jnp.float32)

    y = patch_merging_forward(x, gamma, beta, conv_w)
    y = jax.block_until_ready(y)

    y_ref = _reference(x, gamma, beta, conv_w)
    assert y.shape == (B, C2, H // 2, W // 2), y.shape
    assert jnp.allclose(y, y_ref, rtol=1e-4, atol=1e-5), (
        float(jnp.max(jnp.abs(y - y_ref))))

    print("KERNEL_OK")
</pallas_src>

<mosaic_0001>
module attributes {stable_mosaic.version = 11 : i64} {
  func.func @_patch_merging_kernel(%arg0: i32, %arg1: memref<8x16x16xf32, #tpu.memory_space<vmem>>, %arg2: memref<1x16xf32, #tpu.memory_space<vmem>>, %arg3: memref<1x16xf32, #tpu.memory_space<vmem>>, %arg4: memref<8x16xf32, #tpu.memory_space<vmem>>, %arg5: memref<8x8x16xf32, #tpu.memory_space<vmem>>, %arg6: memref<8x16x16xf32, #tpu.memory_space<vmem>>) attributes {dimension_semantics = [#tpu.dimension_semantics<parallel>], iteration_bounds = array<i64: 2>, scalar_prefetch = 0 : i64, scratch_operands = 1 : i64, tpu.core_type = #tpu.core_type<tc>, window_params = [{transform_indices = @transform_0, window_bounds = array<i64: 8, 16, 16>}, {pipeline_mode = #tpu.pipeline_mode<synchronous>, transform_indices = @transform_1, window_bounds = array<i64: 1, 16>}, {pipeline_mode = #tpu.pipeline_mode<synchronous>, transform_indices = @transform_2, window_bounds = array<i64: 1, 16>}, {pipeline_mode = #tpu.pipeline_mode<synchronous>, transform_indices = @transform_3, window_bounds = array<i64: 8, 16>}, {transform_indices = @transform_4, window_bounds = array<i64: 8, 8, 16>}]} {
    %c0 = arith.constant 0 : index
    %c0_0 = arith.constant 0 : index
    %c0_1 = arith.constant 0 : index
    %0 = vector.load %arg1[%c0, %c0_0, %c0_1] : memref<8x16x16xf32, #tpu.memory_space<vmem>>, vector<8x16x16xf32>
    %cst = arith.constant dense<0.000000e+00> : vector<8x16xf32>
    %1 = vector.multi_reduction <add>, %0, %cst [2] : vector<8x16x16xf32> to vector<8x16xf32>
    %2 = vector.shape_cast %1 : vector<8x16xf32> to vector<8x16x1xf32>
    %cst_2 = arith.constant 1.600000e+01 : f32
    %3 = vector.broadcast %cst_2 : f32 to vector<8x16x1xf32>
    %4 = arith.divf %2, %3 : vector<8x16x1xf32>
    %5 = arith.mulf %0, %0 : vector<8x16x16xf32>
    %cst_3 = arith.constant dense<0.000000e+00> : vector<8x16xf32>
    %6 = vector.multi_reduction <add>, %5, %cst_3 [2] : vector<8x16x16xf32> to vector<8x16xf32>
    %7 = vector.shape_cast %6 : vector<8x16xf32> to vector<8x16x1xf32>
    %cst_4 = arith.constant 1.600000e+01 : f32
    %8 = vector.broadcast %cst_4 : f32 to vector<8x16x1xf32>
    %9 = arith.divf %7, %8 : vector<8x16x1xf32>
    %10 = arith.mulf %4, %4 : vector<8x16x1xf32>
    %11 = arith.subf %9, %10 : vector<8x16x1xf32>
    %cst_5 = arith.constant 9.99999974E-6 : f32
    %12 = vector.broadcast %cst_5 : f32 to vector<8x16x1xf32>
    %13 = arith.addf %11, %12 : vector<8x16x1xf32>
    %14 = math.rsqrt %13 : vector<8x16x1xf32>
    %15 = vector.broadcast %4 : vector<8x16x1xf32> to vector<8x16x16xf32>
    %16 = arith.subf %0, %15 : vector<8x16x16xf32>
    %17 = vector.broadcast %14 : vector<8x16x1xf32> to vector<8x16x16xf32>
    %18 = arith.mulf %16, %17 : vector<8x16x16xf32>
    %c0_6 = arith.constant 0 : index
    %c0_7 = arith.constant 0 : index
    %19 = vector.load %arg2[%c0_6, %c0_7] : memref<1x16xf32, #tpu.memory_space<vmem>>, vector<1x16xf32>
    %20 = vector.shape_cast %19 : vector<1x16xf32> to vector<1x1x16xf32>
    %21 = vector.broadcast %20 : vector<1x1x16xf32> to vector<8x16x16xf32>
    %22 = arith.mulf %18, %21 : vector<8x16x16xf32>
    %c0_8 = arith.constant 0 : index
    %c0_9 = arith.constant 0 : index
    %23 = vector.load %arg3[%c0_8, %c0_9] : memref<1x16xf32, #tpu.memory_space<vmem>>, vector<1x16xf32>
    %24 = vector.shape_cast %23 : vector<1x16xf32> to vector<1x1x16xf32>
    %25 = vector.broadcast %24 : vector<1x1x16xf32> to vector<8x16x16xf32>
    %26 = arith.addf %22, %25 : vector<8x16x16xf32>
    %c0_10 = arith.constant 0 : index
    %c0_11 = arith.constant 0 : index
    %c0_12 = arith.constant 0 : index
    %27 = vector.load %arg6[%c0_10, %c0_11, %c0_12] : memref<8x16x16xf32, #tpu.memory_space<vmem>>, vector<8x16x16xf32>
    tpu.vector_store %arg6[%c0_10, %c0_11, %c0_12], %26 {strides = array<i32>} : memref<8x16x16xf32, #tpu.memory_space<vmem>>, vector<8x16x16xf32>,
    %c0_13 = arith.constant 0 : index
    %c0_14 = arith.constant 0 : index
    %28 = vector.load %arg4[%c0_13, %c0_14] : memref<8x16xf32, #tpu.memory_space<vmem>>, vector<8x16xf32>
    %c0_i32 = arith.constant 0 : i32
    %c8_i32 = arith.constant 8 : i32
    %29 = arith.addi %c0_i32, %c8_i32 : i32
    %c1_i32 = arith.constant 1 : i32
    scf.for %arg7 = %c0_i32 to %29 step %c1_i32  : i32 {
      %30 = arith.index_cast %arg7 : i32 to index
      %c0_16 = arith.constant 0 : index
      %c0_17 = arith.constant 0 : index
      %31 = vector.load %arg6[%30, %c0_16, %c0_17] : memref<8x16x16xf32, #tpu.memory_space<vmem>>, vector<1x16x16xf32>
      %32 = vector.shape_cast %31 : vector<1x16x16xf32> to vector<16x16xf32>
      %cst_18 = arith.constant dense<0.000000e+00> : vector<8x16xf32>
      %33 = tpu.matmul %28, %32, %cst_18 {dimension_numbers = #tpu.dot_dimension_numbers<[1], [0], [0], [1], [0, 0, 1, 1], [], []>} : vector<8x16xf32>, vector<16x16xf32>, vector<8x16xf32> -> vector<8x16xf32>
      %34 = arith.index_cast %arg7 : i32 to index
      %c0_19 = arith.constant 0 : index
      %c0_20 = arith.constant 0 : index
      %35 = vector.load %arg5[%34, %c0_19, %c0_20] : memref<8x8x16xf32, #tpu.memory_space<vmem>>, vector<1x8x16xf32>
      %36 = vector.shape_cast %35 : vector<1x8x16xf32> to vector<8x16xf32>
      %37 = vector.shape_cast %33 : vector<8x16xf32> to vector<1x8x16xf32>
      tpu.vector_store %arg5[%34, %c0_19, %c0_20], %37 {strides = array<i32>} : memref<8x8x16xf32, #tpu.memory_space<vmem>>, vector<1x8x16xf32>,
    }
    %c8_i32_15 = arith.constant 8 : i32
    return
  }
  func.func @transform_0(%arg0: i32) -> (i32, i32, i32) {
    %c0_i32 = arith.constant 0 : i32
    %c0_i32_0 = arith.constant 0 : i32
    %c0_i32_1 = arith.constant 0 : i32
    return %arg0, %c0_i32, %c0_i32_0 : i32, i32, i32
  }
  func.func @transform_1(%arg0: i32) -> (i32, i32) {
    %c0_i32 = arith.constant 0 : i32
    %c0_i32_0 = arith.constant 0 : i32
    %c0_i32_1 = arith.constant 0 : i32
    return %c0_i32, %c0_i32_0 : i32, i32
  }
  func.func @transform_2(%arg0: i32) -> (i32, i32) {
    %c0_i32 = arith.constant 0 : i32
    %c0_i32_0 = arith.constant 0 : i32
    %c0_i32_1 = arith.constant 0 : i32
    return %c0_i32, %c0_i32_0 : i32, i32
  }
  func.func @transform_3(%arg0: i32) -> (i32, i32) {
    %c0_i32 = arith.constant 0 : i32
    %c0_i32_0 = arith.constant 0 : i32
    %c0_i32_1 = arith.constant 0 : i32
    return %c0_i32, %c0_i32_0 : i32, i32
  }
  func.func @transform_4(%arg0: i32) -> (i32, i32, i32) {
    %c0_i32 = arith.constant 0 : i32
    %c0_i32_0 = arith.constant 0 : i32
    %c0_i32_1 = arith.constant 0 : i32
    return %arg0, %c0_i32, %c0_i32_0 : i32, i32, i32
  }
}

</mosaic_0001>

<bundles_post_ra>
// kernel: patch_merging_forward.1
= control target key start
LH: loop header
LB: loop body
LE: loop exit
PB: predicated region body
PF: predicated region fallthrough
CT: control target
= control target key end

     0   :  { %s802_s15 = smov 0   ;;  %s1147_s0 = inlined_call_operand.vmem [shape: f32[16,16,16], index: 0, kind: input, shape index: {}]   ;;  %s1148_s1 = inlined_call_operand.vmem [shape: f32[1,16], index: 1, kind: input, shape index: {}]   ;;  %s1149_s2 = inlined_call_operand.vmem [shape: f32[1,16], index: 2, kind: input, shape index: {}]   ;;  %s1150_s3 = inlined_call_operand.vmem [shape: f32[8,16], index: 3, kind: input, shape index: {}]   ;;  %s1151_s4 = inlined_call_operand.vmem [shape: f32[16,8,16], index: 4, kind: output, shape index: {}]  }
   0x1 LB: > { %s676_s16 = sadd.s32 4294967295, %s768_s15   ;;  %p680_p0 = scmp.ge.s32.totalorder %s768_s15, 1  ;;  %s768_s15 = sphi %s802_s15, %s14_s15  }
   0x2   : > { %p164_p1 = scmp.lt.s32.totalorder %s768_s15, 3 }
   0x4   : > { %p165_p2 = pnand %p680_p0, %p164_p1 }
   0x5   : > { %s681_s17 = sshll.u32 (!%p165_p2), %s676_s16, 3  ;;  %vm220_vm0 = vcmask (!%p165_p2), 130048   ;;  %s770_s6 = smov (!%p165_p2), 0  }
   0x6   : > { %168 = sbr.rel (%p165_p2) target bundleno = 470 (0x1d6), region = 36  ;;  %p192_p3 = scmp.lt.s32.totalorder (!%p165_p2), %s681_s17, 15 }
   0xd   : > { %s1153_s17 = smov (!%p192_p3, %s681_s17), 15 }
   0xe   : > { %s693_s18 = sshll.u32 %s1153_s17, 4  ;;  %s685_s19 = sshll.u32 %s1153_s17, 3 }
   0xf   : > { %s813_s22 = scalar_lea.vmem %s1147_s0, %s693_s18  ;;  %s818_s25 = scalar_lea.vmem %s1151_s4, %s685_s19 }
  0x10   : > { %v821_v0 = vld [vmem:[%s813_s22 + $0x10] sm:$0xff]  ;;  %v824_v1 = vld [vmem:[%s813_s22] sm:$0xff]  ;;  %v827_v2 = vld [vmem:[%s813_s22 + $0x18] sm:$0xff] }
  0x11   : > { %v227_v3 = vsel %vm220_vm0, %v821_v0, 0.0  ;;  %v221_v4 = vsel %vm220_vm0, %v824_v1, 0.0  ;;  %v834_v5 = vld [vmem:[%s813_s22 + $0x8] sm:$0xff]  ;;  %v230_v6 = vsel %vm220_vm0, %v827_v2, 0.0  ;;  %v844_v9 = vld [vmem:[%s813_s22 + $0x20] sm:$0xff]  ;;  %v851_v12 = vld [vmem:[%s813_s22 + $0x38] sm:$0xff]  ;;  %v286_v33 = vmul.f32 %v824_v1, %v824_v1 }
  0x12   : > { %228 = vadd.xlane.f32.xlu1 %v227_v3  ;;  %222 = vadd.xlane.f32.xlu0 %v221_v4  ;;  %v224_v7 = vsel %vm220_vm0, %v834_v5, 0.0  ;;  %v841_v8 = vld [vmem:[%s813_s22 + $0x28] sm:$0xff]  ;;  %v233_v11 = vsel %vm220_vm0, %v844_v9, 0.0  ;;  %v854_v13 = vld [vmem:[%s813_s22 + $0x30] sm:$0xff]  ;;  %v242_v14 = vsel %vm220_vm0, %v851_v12, 0.0  ;;  %v864_v17 = vld [vmem:[%s813_s22 + $0x40] sm:$0xff]  ;;  %v287_v32 = vmul.f32 %v834_v5, %v834_v5 }
  0x13   : > { %v236_v10 = vsel %vm220_vm0, %v841_v8, 0.0  ;;  %v239_v15 = vsel %vm220_vm0, %v854_v13, 0.0  ;;  %v861_v16 = vld [vmem:[%s813_s22 + $0x48] sm:$0xff]  ;;  %v245_v19 = vsel %vm220_vm0, %v864_v17, 0.0  ;;  %v871_v20 = vld [vmem:[%s813_s22 + $0x58] sm:$0xff]  ;;  %v874_v21 = vld [vmem:[%s813_s22 + $0x50] sm:$0xff]  ;;  %v289_v36 = vmul.f32 %v827_v2, %v827_v2 }
  0x14   : > { %v248_v18 = vsel %vm220_vm0, %v861_v16, 0.0  ;;  %v254_v22 = vsel %vm220_vm0, %v871_v20, 0.0  ;;  %v251_v23 = vsel %vm220_vm0, %v874_v21, 0.0  ;;  %v881_v24 = vld [vmem:[%s813_s22 + $0x68] sm:$0xff]  ;;  %v884_v25 = vld [vmem:[%s813_s22 + $0x60] sm:$0xff]  ;;  %v891_v28 = vld [vmem:[%s813_s22 + $0x78] sm:$0xff]  ;;  %v288_v37 = vmul.f32 %v821_v0, %v821_v0 }
  0x15   : > { %v260_v26 = vsel %vm220_vm0, %v881_v24, 0.0  ;;  %v257_v27 = vsel %vm220_vm0, %v884_v25, 0.0  ;;  %v894_v29 = vld [vmem:[%s813_s22 + $0x70] sm:$0xff]  ;;  %v266_v30 = vsel %vm220_vm0, %v891_v28, 0.0  ;;  %v305_v34 = vsel %vm220_vm0, %v287_v32, 0.0  ;;  %v951_v3 = vld [vmem:[%s1150_s3] sm:$0xff] }
  0x16   : > { %231 = vadd.xlane.f32.xlu1 %v230_v6  ;;  %225 = vadd.xlane.f32.xlu0 %v224_v7  ;;  %v263_v31 = vsel %vm220_vm0, %v894_v29, 0.0  ;;  %v302_v35 = vsel %vm220_vm0, %v286_v33, 0.0  ;;  %v311_v38 = vsel %vm220_vm0, %v289_v36, 0.0  ;;  %v308_v39 = vsel %vm220_vm0, %v288_v37, 0.0 }
  0x17   : > { %v291_v40 = vmul.f32 %v841_v8, %v841_v8  ;;  %v290_v41 = vmul.f32 %v844_v9, %v844_v9  ;;  %v293_v44 = vmul.f32 %v851_v12, %v851_v12  ;;  %v292_v45 = vmul.f32 %v854_v13, %v854_v13 }
  0x18   : > { %v295_v48 = vmul.f32 %v861_v16, %v861_v16  ;;  %v294_v49 = vmul.f32 %v864_v17, %v864_v17  ;;  %v297_v52 = vmul.f32 %v871_v20, %v871_v20  ;;  %v296_v53 = vmul.f32 %v874_v21, %v874_v21 }
  0x19   : > { %v317_v42 = vsel %vm220_vm0, %v291_v40, 0.0  ;;  %v314_v43 = vsel %vm220_vm0, %v290_v41, 0.0  ;;  %v323_v46 = vsel %vm220_vm0, %v293_v44, 0.0  ;;  %v320_v47 = vsel %vm220_vm0, %v292_v45, 0.0 }
  0x1a   : > { %237 = vadd.xlane.f32.xlu1 %v236_v10  ;;  %234 = vadd.xlane.f32.xlu0 %v233_v11  ;;  %v329_v50 = vsel %vm220_vm0, %v295_v48, 0.0  ;;  %v326_v51 = vsel %vm220_vm0, %v294_v49, 0.0  ;;  %v335_v54 = vsel %vm220_vm0, %v297_v52, 0.0  ;;  %v332_v55 = vsel %vm220_vm0, %v296_v53, 0.0 }
  0x1b   : > { %v299_v56 = vmul.f32 %v881_v24, %v881_v24  ;;  %v298_v57 = vmul.f32 %v884_v25, %v884_v25  ;;  %v301_v60 = vmul.f32 %v891_v28, %v891_v28  ;;  %v300_v61 = vmul.f32 %v894_v29, %v894_v29 }
  0x1d   : > { %v341_v58 = vsel %vm220_vm0, %v299_v56, 0.0  ;;  %v338_v59 = vsel %vm220_vm0, %v298_v57, 0.0  ;;  %v347_v62 = vsel %vm220_vm0, %v301_v60, 0.0  ;;  %v344_v63 = vsel %vm220_vm0, %v300_v61, 0.0 }
  0x1e   : > { %243 = vadd.xlane.f32.xlu1 %v242_v14  ;;  %240 = vadd.xlane.f32.xlu0 %v239_v15 }
  0x22   : > { %249 = vadd.xlane.f32.xlu1 %v248_v18  ;;  %246 = vadd.xlane.f32.xlu0 %v245_v19 }
  0x26   : > { %255 = vadd.xlane.f32.xlu1 %v254_v22  ;;  %252 = vadd.xlane.f32.xlu0 %v251_v23 }
  0x2a   : > { %261 = vadd.xlane.f32.xlu1 %v260_v26  ;;  %258 = vadd.xlane.f32.xlu0 %v257_v27 }
  0x2e   : > { %267 = vadd.xlane.f32.xlu1 %v266_v30  ;;  %264 = vadd.xlane.f32.xlu0 %v263_v31 }
  0x32   : > { %306 = vadd.xlane.f32.xlu1 %v305_v34  ;;  %303 = vadd.xlane.f32.xlu0 %v302_v35 }
  0x36   : > { %312 = vadd.xlane.f32.xlu1 %v311_v38  ;;  %309 = vadd.xlane.f32.xlu0 %v308_v39 }
  0x3a   : > { %318 = vadd.xlane.f32.xlu1 %v317_v42  ;;  %315 = vadd.xlane.f32.xlu0 %v314_v43 }
  0x3e   : > { %324 = vadd.xlane.f32.xlu1 %v323_v46  ;;  %321 = vadd.xlane.f32.xlu0 %v320_v47 }
  0x42   : > { %330 = vadd.xlane.f32.xlu1 %v329_v50  ;;  %327 = vadd.xlane.f32.xlu0 %v326_v51 }
  0x46   : > { %336 = vadd.xlane.f32.xlu1 %v335_v54  ;;  %333 = vadd.xlane.f32.xlu0 %v332_v55 }
  0x4a   : > { %342 = vadd.xlane.f32.xlu1 %v341_v58  ;;  %339 = vadd.xlane.f32.xlu0 %v338_v59 }
  0x4e   : > { %348 = vadd.xlane.f32.xlu1 %v347_v62  ;;  %345 = vadd.xlane.f32.xlu0 %v344_v63 }
  0x9f   : > { %v229_v4 = vpop.xlane.xlu1 %228  ;;  %v223_v6 = vpop.xlane.xlu0 %222 }
  0xa0   : > { %v965_v33 = vmul.f32 0.0625, %v223_v6  ;;  %v969_v35 = vmul.f32 0.0625, %v229_v4 }
  0xa2   : > { %v366_v39 = vmul.f32 %v965_v33, %v965_v33  ;;  %v368_v46 = vmul.f32 %v969_v35, %v969_v35 }
  0xa3   : > { %v232_v7 = vpop.xlane.xlu1 %231  ;;  %v226_v10 = vpop.xlane.xlu0 %225 }
  0xa4   : > { %v967_v34 = vmul.f32 0.0625, %v226_v10  ;;  %v971_v36 = vmul.f32 0.0625, %v232_v7  ;;  %v432_v10 = vsub.f32 %v821_v0, %v969_v35 }
  0xa6   : > { %v367_v40 = vmul.f32 %v967_v34, %v967_v34  ;;  %v369_v47 = vmul.f32 %v971_v36, %v971_v36 }
  0xa7   : > { %v238_v11 = vpop.xlane.xlu1 %237  ;;  %v235_v14 = vpop.xlane.xlu0 %234 }
  0xa8   : > { %v977_v43 = vmul.f32 0.0625, %v238_v11  ;;  %v983_v48 = vmul.f32 0.0625, %v235_v14  ;;  %v430_v11 = vsub.f32 %v824_v1, %v965_v33  ;;  %v433_v14 = vsub.f32 %v827_v2, %v971_v36 }
  0xaa   : > { %v371_v55 = vmul.f32 %v977_v43, %v977_v43  ;;  %v370_v58 = vmul.f32 %v983_v48, %v983_v48 }
  0xab   : > { %v244_v15 = vpop.xlane.xlu1 %243  ;;  %v241_v18 = vpop.xlane.xlu0 %240 }
  0xac   : > { %v989_v59 = vmul.f32 0.0625, %v244_v15  ;;  %v991_v60 = vmul.f32 0.0625, %v241_v18  ;;  %v431_v15 = vsub.f32 %v834_v5, %v967_v34  ;;  %v434_v34 = vsub.f32 %v844_v9, %v983_v48 }
  0xaf   : > { %v250_v19 = vpop.xlane.xlu1 %249  ;;  %v247_v22 = vpop.xlane.xlu0 %246 }
  0xb0   : > { %v1001_v18 = vmul.f32 0.0625, %v250_v19  ;;  %v435_v19 = vsub.f32 %v841_v8, %v977_v43 }
  0xb3   : > { %v953_v23 = vpop.xlane.xlu1 %255  ;;  %v955_v26 = vpop.xlane.xlu0 %252 }
  0xb7   : > { %v957_v27 = vpop.xlane.xlu1 %261  ;;  %v959_v30 = vpop.xlane.xlu0 %258 }
  0xbb   : > { %v961_v31 = vpop.xlane.xlu1 %267  ;;  %v963_v32 = vpop.xlane.xlu0 %264 }
  0xbf   : > { %v307_v37 = vpop.xlane.xlu1 %306  ;;  %v304_v38 = vpop.xlane.xlu0 %303 }
  0xc0   : > { %v351_v41 = vmul.f32 0.0625, %v307_v37  ;;  %v350_v42 = vmul.f32 0.0625, %v304_v38 }
  0xc2   : > { %v383_v44 = vsub.f32 %v351_v41, %v367_v40  ;;  %v382_v45 = vsub.f32 %v350_v42, %v366_v39  ;;  %v373_v39 = vmul.f32 %v989_v59, %v989_v59  ;;  %v372_v40 = vmul.f32 %v991_v60, %v991_v60 }
  0xc3   : > { %v313_v49 = vpop.xlane.xlu1 %312  ;;  %v310_v50 = vpop.xlane.xlu0 %309  ;;  %v1007_v41 = vmul.f32 0.0625, %v247_v22  ;;  %v375_v22 = vmul.f32 %v1001_v18, %v1001_v18 }
  0xc4   : > { %v399_v51 = vadd.f32 1e-05, %v383_v44  ;;  %v398_v52 = vadd.f32 1e-05, %v382_v45  ;;  %v353_v53 = vmul.f32 0.0625, %v313_v49  ;;  %v352_v54 = vmul.f32 0.0625, %v310_v50 }
  0xc5   : > { %v437_v44 = vsub.f32 %v851_v12, %v989_v59  ;;  %v1016_v45 = vmul.f32 0.0625, %v953_v23  ;;  %v374_v49 = vmul.f32 %v1007_v41, %v1007_v41  ;;  %v1023_v50 = vmul.f32 0.0625, %v955_v26  ;;  %v1031_v23 = vld [vmem:[%s1148_s1] ss:$0 sm:$0xff] }
  0xc6   : > { %726 = vrsqrt.f32 %v399_v51  ;;  %v385_v56 = vsub.f32 %v353_v53, %v369_v47  ;;  %v384_v57 = vsub.f32 %v352_v54, %v368_v46  ;;  %v1026_v51 = vmul.f32 0.0625, %v957_v27 }
  0xc7   : > { %728 = vrsqrt.f32 %v398_v52  ;;  %v319_v61 = vpop.xlane.xlu1 %318  ;;  %v316_v62 = vpop.xlane.xlu0 %315  ;;  %v436_v26 = vsub.f32 %v854_v13, %v991_v60  ;;  %v377_v27 = vmul.f32 %v1016_v45, %v1016_v45  ;;  %v438_v59 = vsub.f32 %v864_v17, %v1007_v41 }
  0xc8   : > { %v401_v63 = vadd.f32 1e-05, %v385_v56  ;;  %v400_v4 = vadd.f32 1e-05, %v384_v57  ;;  %v355_v6 = vmul.f32 0.0625, %v319_v61  ;;  %v354_v7 = vmul.f32 0.0625, %v316_v62 }
  0xc9   : > { %v1038_v62 = vmul.f32 0.0625, %v959_v30 }
  0xca   : > { %730 = vrsqrt.f32 %v401_v63  ;;  %v387_v37 = vsub.f32 %v355_v6, %v371_v55  ;;  %v386_v38 = vsub.f32 %v354_v7, %v370_v58 }
  0xcb   : > { %732 = vrsqrt.f32 %v400_v4  ;;  %v325_v1 = vpop.xlane.xlu1 %324  ;;  %v322_v33 = vpop.xlane.xlu0 %321  ;;  %v1043_v4 = vld [vmem:[%s1149_s2] ss:$0 sm:$0xff] }
  0xcc   : > { %v403_v2 = vadd.f32 1e-05, %v387_v37  ;;  %v402_v36 = vadd.f32 1e-05, %v386_v38  ;;  %v357_v42 = vmul.f32 0.0625, %v325_v1  ;;  %v356_v5 = vmul.f32 0.0625, %v322_v33 }
  0xcd   : > { %v376_v38 = vmul.f32 %v1023_v50, %v1023_v50 }
  0xce   : > { %734 = vrsqrt.f32 %v403_v2  ;;  %v389_v46 = vsub.f32 %v357_v42, %v373_v39  ;;  %v388_v47 = vsub.f32 %v356_v5, %v372_v40  ;;  %v379_v39 = vmul.f32 %v1026_v51, %v1026_v51 }
  0xcf   : > { %736 = vrsqrt.f32 %v402_v36  ;;  %v331_v52 = vpop.xlane.xlu1 %330  ;;  %v328_v53 = vpop.xlane.xlu0 %327  ;;  %v378_v5 = vmul.f32 %v1038_v62, %v1038_v62 }
  0xd0   : > { %v727_v54 = vpop.eup %726  ;;  %v405_v55 = vadd.f32 1e-05, %v389_v46  ;;  %v404_v56 = vadd.f32 1e-05, %v388_v47  ;;  %v359_v57 = vmul.f32 0.0625, %v331_v52  ;;  %v358_v58 = vmul.f32 0.0625, %v328_v53 }
  0xd1   : > { %v729_v61 = vpop.eup %728  ;;  %v447_v63 = vmul.f32 %v727_v54, %v431_v15  ;;  %v1059_v54 = vmul.f32 0.0625, %v961_v31  ;;  %v1066_v31 = vmul.f32 0.0625, %v963_v32 }
  0xd2   : > { %v446_v6 = vmul.f32 %v729_v61, %v430_v11  ;;  %738 = vrsqrt.f32 %v405_v55  ;;  %v391_v7 = vsub.f32 %v359_v57, %v375_v22  ;;  %v390_v37 = vsub.f32 %v358_v58, %v374_v49 }
  0xd3   : > { %v470_v40 = vmul.f32 %v1031_v23, %v447_v63  ;;  %740 = vrsqrt.f32 %v404_v56  ;;  %v337_v30 = vpop.xlane.xlu1 %336  ;;  %v334_v15 = vpop.xlane.xlu0 %333 }
  0xd4   : > { %v731_v1 = vpop.eup %730  ;;  %v469_v33 = vmul.f32 %v1031_v23, %v446_v6  ;;  %v407_v2 = vadd.f32 1e-05, %v391_v7  ;;  %v406_v36 = vadd.f32 1e-05, %v390_v37  ;;  %v361_v11 = vmul.f32 0.0625, %v337_v30 }
  0xd5   : > { %v733_v42 = vpop.eup %732  ;;  %v493_v22 = vadd.f32 %v1043_v4, %v470_v40  ;;  %v449_v46 = vmul.f32 %v731_v1, %v433_v14  ;;  %v360_v47 = vmul.f32 0.0625, %v334_v15  ;;  %v381_v30 = vmul.f32 %v1059_v54, %v1059_v54 }
  0xd6   : > { %v492_v49 = vadd.f32 %v1043_v4, %v469_v33  ;;  %v448_v52 = vmul.f32 %v733_v42, %v432_v10  ;;  %742 = vrsqrt.f32 %v407_v2  ;;  %v393_v53 = vsub.f32 %v361_v11, %v377_v27 }
  0xd7   : > { %509 = vst.msk [vmem:[#allocation2 + $0x8] sm:$0xff] %vm220_vm0, %v493_v22  ;;  %v472_v55 = vmul.f32 %v1031_v23, %v449_v46  ;;  %744 = vrsqrt.f32 %v406_v36  ;;  %v392_v56 = vsub.f32 %v360_v47, %v376_v38  ;;  %v343_v57 = vpop.xlane.xlu1 %342  ;;  %v340_v14 = vpop.xlane.xlu0 %339  ;;  %v380_v33 = vmul.f32 %v1066_v31, %v1066_v31 }
  0xd8   : > { %v735_v58 = vpop.eup %734  ;;  %508 = vst.msk [vmem:[#allocation2] sm:$0xff] %vm220_vm0, %v492_v49  ;;  %v471_v61 = vmul.f32 %v1031_v23, %v448_v52  ;;  %v409_v0 = vadd.f32 1e-05, %v393_v53  ;;  %v363_v35 = vmul.f32 0.0625, %v343_v57  ;;  %v362_v10 = vmul.f32 0.0625, %v340_v14 }
  0xd9   : > { %v737_v27 = vpop.eup %736  ;;  %v495_v63 = vadd.f32 %v1043_v4, %v472_v55  ;;  %v451_v6 = vmul.f32 %v735_v58, %v435_v19  ;;  %v408_v7 = vadd.f32 1e-05, %v392_v56  ;;  %v439_v46 = vsub.f32 %v861_v16, %v1001_v18 }
  0xda   : > { %v494_v37 = vadd.f32 %v1043_v4, %v471_v61  ;;  %v450_v38 = vmul.f32 %v737_v27, %v434_v34  ;;  %746 = vrsqrt.f32 %v409_v0  ;;  %v395_v40 = vsub.f32 %v363_v35, %v379_v39 }
  0xdb   : > { %511 = vst.msk [vmem:[#allocation2 + $0x18] sm:$0xff] %vm220_vm0, %v495_v63  ;;  %v474_v32 = vmul.f32 %v1031_v23, %v451_v6  ;;  %748 = vrsqrt.f32 %v408_v7  ;;  %v394_v15 = vsub.f32 %v362_v10, %v378_v5  ;;  %v349_v8 = vpop.xlane.xlu1 %348  ;;  %v346_v43 = vpop.xlane.xlu0 %345  ;;  %v441_v55 = vsub.f32 %v871_v20, %v1016_v45 }
  0xdc   : > { %v739_v19 = vpop.eup %738  ;;  %510 = vst.msk [vmem:[#allocation2 + $0x10] sm:$0xff] %vm220_vm0, %v494_v37  ;;  %v473_v1 = vmul.f32 %v1031_v23, %v450_v38  ;;  %v411_v9 = vadd.f32 1e-05, %v395_v40  ;;  %v365_v48 = vmul.f32 0.0625, %v349_v8  ;;  %v364_v34 = vmul.f32 0.0625, %v346_v43 }
  0xdd   : > { %v741_v39 = vpop.eup %740  ;;  %v497_v2 = vadd.f32 %v1043_v4, %v474_v32  ;;  %v453_v36 = vmul.f32 %v739_v19, %v437_v44  ;;  %v410_v11 = vadd.f32 1e-05, %v394_v15  ;;  %v440_v56 = vsub.f32 %v874_v21, %v1023_v50 }
  0xde   : > { %v496_v42 = vadd.f32 %v1043_v4, %v473_v1  ;;  %v452_v5 = vmul.f32 %v741_v39, %v436_v26  ;;  %750 = vrsqrt.f32 %v411_v9  ;;  %v397_v22 = vsub.f32 %v365_v48, %v381_v30 }
  0xdf   : > { %513 = vst.msk [vmem:[#allocation2 + $0x28] sm:$0xff] %vm220_vm0, %v497_v2  ;;  %v476_v47 = vmul.f32 %v1031_v23, %v453_v36  ;;  %752 = vrsqrt.f32 %v410_v11  ;;  %v396_v49 = vsub.f32 %v364_v34, %v380_v33  ;;  %v443_v45 = vsub.f32 %v881_v24, %v1026_v51 }
  0xe0   : > { %v743_v12 = vpop.eup %742  ;;  %512 = vst.msk [vmem:[#allocation2 + $0x20] sm:$0xff] %vm220_vm0, %v496_v42  ;;  %v475_v13 = vmul.f32 %v1031_v23, %v452_v5  ;;  %v413_v60 = vadd.f32 1e-05, %v397_v22  ;;  %v442_v21 = vsub.f32 %v884_v25, %v1038_v62  ;;  %v445_v24 = vsub.f32 %v891_v28, %v1059_v54 }
  0xe1   : > { %v745_v44 = vpop.eup %744  ;;  %v499_v26 = vadd.f32 %v1043_v4, %v476_v47  ;;  %v455_v52 = vmul.f32 %v743_v12, %v439_v46  ;;  %v412_v16 = vadd.f32 1e-05, %v396_v49  ;;  %v444_v25 = vsub.f32 %v894_v29, %v1066_v31 }
  0xe2   : > { %v498_v18 = vadd.f32 %v1043_v4, %v475_v13  ;;  %v454_v53 = vmul.f32 %v745_v44, %v438_v59  ;;  %754 = vrsqrt.f32 %v413_v60 }
  0xe3   : > { %515 = vst.msk [vmem:[#allocation2 + $0x38] sm:$0xff] %vm220_vm0, %v499_v26  ;;  %v478_v17 = vmul.f32 %v1031_v23, %v455_v52  ;;  %756 = vrsqrt.f32 %v412_v16 }
  0xe4   : > { %v747_v41 = vpop.eup %746  ;;  %514 = vst.msk [vmem:[#allocation2 + $0x30] sm:$0xff] %vm220_vm0, %v498_v18  ;;  %v477_v57 = vmul.f32 %v1031_v23, %v454_v53 }
  0xe5   : > { %v749_v14 = vpop.eup %748  ;;  %v501_v58 = vadd.f32 %v1043_v4, %v478_v17  ;;  %v457_v61 = vmul.f32 %v747_v41, %v441_v55 }
  0xe6   : > { %v500_v0 = vadd.f32 %v1043_v4, %v477_v57  ;;  %v456_v20 = vmul.f32 %v749_v14, %v440_v56 }
  0xe7   : > { %517 = vst.msk [vmem:[#allocation2 + $0x48] sm:$0xff] %vm220_vm0, %v501_v58  ;;  %v480_v35 = vmul.f32 %v1031_v23, %v457_v61 }
  0xe8   : > { %v751_v10 = vpop.eup %750  ;;  %516 = vst.msk [vmem:[#allocation2 + $0x40] sm:$0xff] %vm220_vm0, %v500_v0  ;;  %v479_v50 = vmul.f32 %v1031_v23, %v456_v20 }
  0xe9   : > { %v753_v27 = vpop.eup %752  ;;  %v503_v63 = vadd.f32 %v1043_v4, %v480_v35  ;;  %v459_v6 = vmul.f32 %v751_v10, %v443_v45 }
  0xea   : > { %v502_v7 = vadd.f32 %v1043_v4, %v479_v50  ;;  %v458_v37 = vmul.f32 %v753_v27, %v442_v21 }
  0xeb   : > { %519 = vst.msk [vmem:[#allocation2 + $0x58] sm:$0xff] %vm220_vm0, %v503_v63  ;;  %v482_v51 = vmul.f32 %v1031_v23, %v459_v6 }
  0xec   : > { %v755_v38 = vpop.eup %754  ;;  %518 = vst.msk [vmem:[#allocation2 + $0x50] sm:$0xff] %vm220_vm0, %v502_v7  ;;  %v481_v62 = vmul.f32 %v1031_v23, %v458_v37 }
  0xed   : > { %v757_v40 = vpop.eup %756  ;;  %v505_v30 = vadd.f32 %v1043_v4, %v482_v51  ;;  %v461_v32 = vmul.f32 %v755_v38, %v445_v24 }
  0xee   : > { %v504_v15 = vadd.f32 %v1043_v4, %v481_v62  ;;  %v460_v8 = vmul.f32 %v757_v40, %v444_v25 }
  0xef   : > { %521 = vst.msk [vmem:[#allocation2 + $0x68] sm:$0xff] %vm220_vm0, %v505_v30  ;;  %v484_v28 = vmul.f32 %v1031_v23, %v461_v32 }
  0xf0   : > { %520 = vst.msk [vmem:[#allocation2 + $0x60] sm:$0xff] %vm220_vm0, %v504_v15  ;;  %v483_v54 = vmul.f32 %v1031_v23, %v460_v8 }
  0xf1   : > { %v507_v29 = vadd.f32 %v1043_v4, %v484_v28 }
  0xf2   : > { %v506_v31 = vadd.f32 %v1043_v4, %v483_v54 }
  0xf3   : > { %523 = vst.msk [vmem:[#allocation2 + $0x78] sm:$0xff] %vm220_vm0, %v507_v29 }
  0xf4   : > { %522 = vst.msk [vmem:[#allocation2 + $0x70] sm:$0xff] %vm220_vm0, %v506_v31 }
  0xf5 LB: >> { %v774_v43 = vmov 0.0|0.0   ;;  %vm775_vm1 = vmmov 0   ;;  %v776_v19 = vmov 0.0   ;;  %s688_s7 = sshll.u32 %s772_s6, 4  ;;  %s690_s9 = sshll.u32 %s772_s6, 3  ;;  %s772_s6 = sphi %s770_s6, %s530_s6  }
  0xf6   : >> { %704 = vmatprep.subr.bf16.mxu0 %v774_v43  ;;  %701 = vmatprep.mubr.msk.f32.mxu0 %vm775_vm1, %v776_v19  ;;  %s532_s8 = scalar_lea.vmem [#allocation2], %s688_s7  ;;  %s609_s10 = scalar_lea.vmem %s818_s25, %s690_s9 }
  0xf7   : >> { %s530_s6 = sadd.s32 1, %s772_s6  }
  0xf8   : >> { %p527_p4 = scmp.ge.s32.totalorder %s530_s6, 8  }
  0xfb   : >> { %v533_v23 = vld [vmem:[%s532_s8] sm:$0xff]  ;;  %v534_v1 = vld [vmem:[%s532_s8 + $0x8] sm:$0xff] }
  0xfc   : >> { %v705_v9 = vpack.c.bf16 %v534_v1, %v533_v23 }
  0xfe   : >> { %706 = vmatpush3.bf16.msra.mxu0 %v705_v9 }
 0x101   : >> { %702 = vmatmul.mubr.msk.f32.vlgmr.msra.gmra.mrb[0].mxu0 %vm220_vm0, %v951_v3 }
 0x1cf   : > { %529 = sbr.rel (!%p527_p4) target bundleno = 245 (0xf5), region = 75 }
 0x1d4   : >> { %v604_v4 = vpop.f32.mrb[0].mxu0 }
 0x1d5   : >> { %610 = vst.msk [vmem:[%s609_s10] sm:$0xff] %vm220_vm0, %v604_v4  ;;  %v703_v48 = vpop.f32.mrb[1].mxu0 }
 0x1d6 PF: > { %s14_s15 = sadd.s32 1, %s768_s15  }
 0x1d7   : > { %p11_p5 = scmp.ge.s32.totalorder %s14_s15, 4  }
 0x1d9   :  { %13 = sbr.rel (!%p11_p5) target bundleno = 1 (0x1), region = 86 }

</bundles_post_ra>
